<compile_context>
chip_gen: v6e
topology: v6e:2x2x1
jax: 0.10.0
libtpu: 0.0.40
codegen_flags: <defaults>
</compile_context>

<pallas_src>
import jax
import jax.numpy as jnp
from jax.experimental import pallas as pl
from jax.experimental.pallas import tpu as pltpu

# ---- static config -----------------------------------------------------------
IN_SIZE = 32
Z_SIZE = 8
FEAT_IN = IN_SIZE + Z_SIZE        # 40  (state | z), fed to the kernel un-split
OUT_SIZE = 8
HIDDEN = 32
HIDDEN_DEPTH = 2
MID_SZ = 32
FUSED = HIDDEN + MID_SZ           # 64  width of fused [h0 | g] tile
FILM_POS = (1,)
NO_BIAS = False
BATCH_NORM = False


def _round_up(n, m):
    return ((n + m - 1) // m) * m


# ---- Pallas kernel: one batch tile per grid step ------------------------------
def film_dqn_kernel(xz_ref,
                    wa_ref, ba_ref,            # fused layer0 + film-gen layer0
                    wsc_ref, bsc_ref,          # film scale head (zero-extended)
                    wsh_ref, bsh_ref,          # film shift head (zero-extended)
                    w1_ref, b1_ref,            # primary layer 1 (zero-extended K)
                    w2_ref, b2_ref,            # primary layer 2 (output head)
                    out_ref):
    xz = xz_ref[...]                                              # (TB, 40)

    # fused: hg = [ relu(x@w0+b0) | relu(z@g0w+g0b) ]             # (TB, 64)
    hg = jnp.dot(xz, wa_ref[...], preferred_element_type=jnp.float32) + ba_ref[...]
    hg = jnp.maximum(hg, 0.0)

    # FiLM scale/shift, lane-aligned 64-wide (cols >= HIDDEN are exactly zero)
    scale = jnp.dot(hg, wsc_ref[...], preferred_element_type=jnp.float32) + bsc_ref[...]
    shift = jnp.dot(hg, wsh_ref[...], preferred_element_type=jnp.float32) + bsh_ref[...]

    # modulate: cols 0..31 = scale*h0 + shift, cols 32..63 = 0
    mod = scale * hg + shift                                       # (TB, 64)

    # primary layer 1 (+ReLU); w1 zero-extended so it consumes the 64-wide tile
    h1 = jnp.dot(mod, w1_ref[...], preferred_element_type=jnp.float32) + b1_ref[...]
    h1 = jnp.maximum(h1, 0.0)                                      # (TB, 32)

    # output head (no ReLU)
    out = jnp.dot(h1, w2_ref[...], preferred_element_type=jnp.float32) + b2_ref[...]
    out_ref[...] = out.astype(out_ref.dtype)                       # (TB, 8)


# ---- parameter packing (trace-time, tiny) -------------------------------------
def pack_params(p):
    """Repack logical FilmDQN weights into the fused / lane-aligned layout."""
    f32 = jnp.float32
    w0, b0 = p["w0"].astype(f32), p["b0"].astype(f32)      # (32,32),(1,32)
    g0w, g0b = p["g0w"].astype(f32), p["g0b"].astype(f32)  # (8,32), (1,32)
    g1w, g1b = p["g1w"].astype(f32), p["g1b"].astype(f32)  # (32,64),(1,64)
    w1, b1 = p["w1"].astype(f32), p["b1"].astype(f32)      # (32,32),(1,32)
    w2, b2 = p["w2"].astype(f32), p["b2"].astype(f32)      # (32,8), (1,8)

    # block-diagonal [[w0, 0], [0, g0w]]  -> one (40, 64) matmul on un-split input
    wa = jnp.zeros((FEAT_IN, FUSED), f32)
    wa = wa.at[:IN_SIZE, :HIDDEN].set(w0)
    wa = wa.at[IN_SIZE:, HIDDEN:].set(g0w)
    ba = jnp.concatenate([b0, g0b], axis=1)                                   # (1, 64)

    # film second layer, pre-split into scale/shift halves and zero-extended so each
    # dot reads the full [h0|g] tile and produces a lane-aligned 64-wide result
    wsc = jnp.zeros((FUSED, FUSED), f32).at[HIDDEN:, :HIDDEN].set(g1w[:, :HIDDEN])
    wsh = jnp.zeros((FUSED, FUSED), f32).at[HIDDEN:, :HIDDEN].set(g1w[:, HIDDEN:])
    bsc = jnp.zeros((1, FUSED), f32).at[:, :HIDDEN].set(g1b[:, :HIDDEN])
    bsh = jnp.zeros((1, FUSED), f32).at[:, :HIDDEN].set(g1b[:, HIDDEN:])

    # primary layer 1, zero-extended along K to accept the 64-wide modulated tile
    w1e = jnp.zeros((FUSED, HIDDEN), f32).at[:HIDDEN, :].set(w1)

    return dict(wa=wa, ba=ba, wsc=wsc, bsc=bsc, wsh=wsh, bsh=bsh,
                w1e=w1e, b1=b1, w2=w2, b2=b2)


# ---- wrapper -----------------------------------------------------------------
def film_dqn_forward(state_with_z, params, *, block_b=1024):
    """state_with_z: (B, IN_SIZE + Z_SIZE) -> (B, OUT_SIZE) float32."""
    xz = state_with_z.astype(jnp.float32)
    B = xz.shape[0]
    pp = pack_params(params)

    # batch tile: large enough to amortize per-step overhead, clamped for tiny B
    tb = min(block_b, _round_up(B, 8))
    grid = (pl.cdiv(B, tb),)

    weights = (pp["wa"], pp["ba"], pp["wsc"], pp["bsc"], pp["wsh"], pp["bsh"],
               pp["w1e"], pp["b1"], pp["w2"], pp["b2"])

    in_specs = [pl.BlockSpec((tb, FEAT_IN), lambda b: (b, 0))]          # streamed
    in_specs += [pl.BlockSpec(w.shape, lambda b: (0, 0)) for w in weights]  # resident

    flops = 2 * B * (FEAT_IN * FUSED + 2 * FUSED * FUSED
                     + FUSED * HIDDEN + HIDDEN * OUT_SIZE)
    param_bytes = sum(int(w.size) * 4 for w in weights)
    bytes_accessed = B * (FEAT_IN + OUT_SIZE) * 4 + param_bytes

    return pl.pallas_call(
        film_dqn_kernel,
        out_shape=jax.ShapeDtypeStruct((B, OUT_SIZE), jnp.float32),
        grid=grid,
        in_specs=in_specs,
        out_specs=pl.BlockSpec((tb, OUT_SIZE), lambda b: (b, 0)),
        compiler_params=pltpu.CompilerParams(
            dimension_semantics=("parallel",)),
        cost_estimate=pl.CostEstimate(flops=flops, transcendentals=0,
                                      bytes_accessed=bytes_accessed),
    )(xz, *weights)


# ---- deterministic parameter init (PyTorch Linear default U(-1/sqrt(fan_in),..)) ----
def init_params(key):
    def linear(k, n_in, n_out):
        kw, kb = jax.random.split(k)
        bound = 1.0 / float(n_in) ** 0.5
        w = jax.random.uniform(kw, (n_in, n_out), jnp.float32, -bound, bound)
        b = jax.random.uniform(kb, (1, n_out), jnp.float32, -bound, bound)
        return w, b

    ks = jax.random.split(key, 5)
    w0, b0 = linear(ks[0], IN_SIZE, HIDDEN)        # primary layer 0
    w1, b1 = linear(ks[1], HIDDEN, HIDDEN)         # primary layer 1
    w2, b2 = linear(ks[2], HIDDEN, OUT_SIZE)       # primary layer 2 (head)
    g0w, g0b = linear(ks[3], Z_SIZE, MID_SZ)       # film gen: hidden
    g1w, g1b = linear(ks[4], MID_SZ, 2 * HIDDEN)   # film gen: [scale|shift]
    return dict(w0=w0, b0=b0, w1=w1, b1=b1, w2=w2, b2=b2,
                g0w=g0w, g0b=g0b, g1w=g1w, g1b=g1b)


# ---- pure-JAX reference (mirrors the PyTorch forward) --------------------------
def film_dqn_reference(state_with_z, p):
    x = state_with_z[:, :IN_SIZE]
    z = state_with_z[:, IN_SIZE:]
    h0 = jax.nn.relu(x @ p["w0"] + p["b0"])
    film = jax.nn.relu(z @ p["g0w"] + p["g0b"]) @ p["g1w"] + p["g1b"]
    scale, shift = film[:, :HIDDEN], film[:, HIDDEN:]
    h1 = jax.nn.relu((scale * h0 + shift) @ p["w1"] + p["b1"])
    return h1 @ p["w2"] + p["b2"]


if __name__ == "__main__":
    key = jax.random.PRNGKey(0)
    k_param, k_in1, k_in2 = jax.random.split(key, 3)

    params = init_params(k_param)

    # small batch (single grid step)
    B = 2
    state_with_z = jax.random.normal(k_in1, (B, IN_SIZE + Z_SIZE), jnp.float32)
    out = jax.block_until_ready(film_dqn_forward(state_with_z, params))
    ref = film_dqn_reference(state_with_z, params)
    assert out.shape == (B, OUT_SIZE)
    assert jnp.allclose(out, ref, atol=1e-4, rtol=1e-4)

    # exercise the batch grid with multiple steps and a partial final tile
    B2 = 20
    state_with_z2 = jax.random.normal(k_in2, (B2, IN_SIZE + Z_SIZE), jnp.float32)
    out2 = jax.block_until_ready(film_dqn_forward(state_with_z2, params, block_b=8))
    ref2 = film_dqn_reference(state_with_z2, params)
    assert out2.shape == (B2, OUT_SIZE)
    assert jnp.allclose(out2, ref2, atol=1e-4, rtol=1e-4)

    print("KERNEL_OK")
</pallas_src>

<mosaic_0001>
module attributes {stable_mosaic.version = 11 : i64} {
  func.func @film_dqn_kernel(%arg0: i32, %arg1: memref<8x40xf32, #tpu.memory_space<vmem>>, %arg2: memref<40x64xf32, #tpu.memory_space<vmem>>, %arg3: memref<1x64xf32, #tpu.memory_space<vmem>>, %arg4: memref<64x64xf32, #tpu.memory_space<vmem>>, %arg5: memref<1x64xf32, #tpu.memory_space<vmem>>, %arg6: memref<64x64xf32, #tpu.memory_space<vmem>>, %arg7: memref<1x64xf32, #tpu.memory_space<vmem>>, %arg8: memref<64x32xf32, #tpu.memory_space<vmem>>, %arg9: memref<1x32xf32, #tpu.memory_space<vmem>>, %arg10: memref<32x8xf32, #tpu.memory_space<vmem>>, %arg11: memref<1x8xf32, #tpu.memory_space<vmem>>, %arg12: memref<8x8xf32, #tpu.memory_space<vmem>>) attributes {dimension_semantics = [#tpu.dimension_semantics<parallel>], iteration_bounds = array<i64: 1>, scalar_prefetch = 0 : i64, scratch_operands = 0 : i64, tpu.core_type = #tpu.core_type<tc>, window_params = [{transform_indices = @transform_0, window_bounds = array<i64: 8, 40>}, {pipeline_mode = #tpu.pipeline_mode<synchronous>, transform_indices = @transform_1, window_bounds = array<i64: 40, 64>}, {pipeline_mode = #tpu.pipeline_mode<synchronous>, transform_indices = @transform_2, window_bounds = array<i64: 1, 64>}, {pipeline_mode = #tpu.pipeline_mode<synchronous>, transform_indices = @transform_3, window_bounds = array<i64: 64, 64>}, {pipeline_mode = #tpu.pipeline_mode<synchronous>, transform_indices = @transform_4, window_bounds = array<i64: 1, 64>}, {pipeline_mode = #tpu.pipeline_mode<synchronous>, transform_indices = @transform_5, window_bounds = array<i64: 64, 64>}, {pipeline_mode = #tpu.pipeline_mode<synchronous>, transform_indices = @transform_6, window_bounds = array<i64: 1, 64>}, {pipeline_mode = #tpu.pipeline_mode<synchronous>, transform_indices = @transform_7, window_bounds = array<i64: 64, 32>}, {pipeline_mode = #tpu.pipeline_mode<synchronous>, transform_indices = @transform_8, window_bounds = array<i64: 1, 32>}, {pipeline_mode = #tpu.pipeline_mode<synchronous>, transform_indices = @transform_9, window_bounds = array<i64: 32, 8>}, {pipeline_mode = #tpu.pipeline_mode<synchronous>, transform_indices = @transform_10, window_bounds = array<i64: 1, 8>}, {transform_indices = @transform_11, window_bounds = array<i64: 8, 8>}]} {
    %c0 = arith.constant 0 : index
    %c0_0 = arith.constant 0 : index
    %0 = vector.load %arg1[%c0, %c0_0] : memref<8x40xf32, #tpu.memory_space<vmem>>, vector<8x40xf32>
    %c0_1 = arith.constant 0 : index
    %c0_2 = arith.constant 0 : index
    %1 = vector.load %arg2[%c0_1, %c0_2] : memref<40x64xf32, #tpu.memory_space<vmem>>, vector<40x64xf32>
    %cst = arith.constant dense<0.000000e+00> : vector<8x64xf32>
    %2 = tpu.matmul %0, %1, %cst {dimension_numbers = #tpu.dot_dimension_numbers<[1], [0], [0], [1], [0, 0, 1, 1], [], []>} : vector<8x40xf32>, vector<40x64xf32>, vector<8x64xf32> -> vector<8x64xf32>
    %c0_3 = arith.constant 0 : index
    %c0_4 = arith.constant 0 : index
    %3 = vector.load %arg3[%c0_3, %c0_4] : memref<1x64xf32, #tpu.memory_space<vmem>>, vector<1x64xf32>
    %4 = vector.broadcast %3 : vector<1x64xf32> to vector<8x64xf32>
    %5 = arith.addf %2, %4 : vector<8x64xf32>
    %cst_5 = arith.constant 0.000000e+00 : f32
    %6 = vector.broadcast %cst_5 : f32 to vector<8x64xf32>
    %7 = arith.maximumf %5, %6 : vector<8x64xf32>
    %c0_6 = arith.constant 0 : index
    %c0_7 = arith.constant 0 : index
    %8 = vector.load %arg4[%c0_6, %c0_7] : memref<64x64xf32, #tpu.memory_space<vmem>>, vector<64x64xf32>
    %cst_8 = arith.constant dense<0.000000e+00> : vector<8x64xf32>
    %9 = tpu.matmul %7, %8, %cst_8 {dimension_numbers = #tpu.dot_dimension_numbers<[1], [0], [0], [1], [0, 0, 1, 1], [], []>} : vector<8x64xf32>, vector<64x64xf32>, vector<8x64xf32> -> vector<8x64xf32>
    %c0_9 = arith.constant 0 : index
    %c0_10 = arith.constant 0 : index
    %10 = vector.load %arg5[%c0_9, %c0_10] : memref<1x64xf32, #tpu.memory_space<vmem>>, vector<1x64xf32>
    %11 = vector.broadcast %10 : vector<1x64xf32> to vector<8x64xf32>
    %12 = arith.addf %9, %11 : vector<8x64xf32>
    %c0_11 = arith.constant 0 : index
    %c0_12 = arith.constant 0 : index
    %13 = vector.load %arg6[%c0_11, %c0_12] : memref<64x64xf32, #tpu.memory_space<vmem>>, vector<64x64xf32>
    %cst_13 = arith.constant dense<0.000000e+00> : vector<8x64xf32>
    %14 = tpu.matmul %7, %13, %cst_13 {dimension_numbers = #tpu.dot_dimension_numbers<[1], [0], [0], [1], [0, 0, 1, 1], [], []>} : vector<8x64xf32>, vector<64x64xf32>, vector<8x64xf32> -> vector<8x64xf32>
    %c0_14 = arith.constant 0 : index
    %c0_15 = arith.constant 0 : index
    %15 = vector.load %arg7[%c0_14, %c0_15] : memref<1x64xf32, #tpu.memory_space<vmem>>, vector<1x64xf32>
    %16 = vector.broadcast %15 : vector<1x64xf32> to vector<8x64xf32>
    %17 = arith.addf %14, %16 : vector<8x64xf32>
    %18 = arith.mulf %12, %7 : vector<8x64xf32>
    %19 = arith.addf %18, %17 : vector<8x64xf32>
    %c0_16 = arith.constant 0 : index
    %c0_17 = arith.constant 0 : index
    %20 = vector.load %arg8[%c0_16, %c0_17] : memref<64x32xf32, #tpu.memory_space<vmem>>, vector<64x32xf32>
    %cst_18 = arith.constant dense<0.000000e+00> : vector<8x32xf32>
    %21 = tpu.matmul %19, %20, %cst_18 {dimension_numbers = #tpu.dot_dimension_numbers<[1], [0], [0], [1], [0, 0, 1, 1], [], []>} : vector<8x64xf32>, vector<64x32xf32>, vector<8x32xf32> -> vector<8x32xf32>
    %c0_19 = arith.constant 0 : index
    %c0_20 = arith.constant 0 : index
    %22 = vector.load %arg9[%c0_19, %c0_20] : memref<1x32xf32, #tpu.memory_space<vmem>>, vector<1x32xf32>
    %23 = vector.broadcast %22 : vector<1x32xf32> to vector<8x32xf32>
    %24 = arith.addf %21, %23 : vector<8x32xf32>
    %cst_21 = arith.constant 0.000000e+00 : f32
    %25 = vector.broadcast %cst_21 : f32 to vector<8x32xf32>
    %26 = arith.maximumf %24, %25 : vector<8x32xf32>
    %c0_22 = arith.constant 0 : index
    %c0_23 = arith.constant 0 : index
    %27 = vector.load %arg10[%c0_22, %c0_23] : memref<32x8xf32, #tpu.memory_space<vmem>>, vector<32x8xf32>
    %cst_24 = arith.constant dense<0.000000e+00> : vector<8x8xf32>
    %28 = tpu.matmul %26, %27, %cst_24 {dimension_numbers = #tpu.dot_dimension_numbers<[1], [0], [0], [1], [0, 0, 1, 1], [], []>} : vector<8x32xf32>, vector<32x8xf32>, vector<8x8xf32> -> vector<8x8xf32>
    %c0_25 = arith.constant 0 : index
    %c0_26 = arith.constant 0 : index
    %29 = vector.load %arg11[%c0_25, %c0_26] : memref<1x8xf32, #tpu.memory_space<vmem>>, vector<1x8xf32>
    %30 = vector.broadcast %29 : vector<1x8xf32> to vector<8x8xf32>
    %31 = arith.addf %28, %30 : vector<8x8xf32>
    %c0_27 = arith.constant 0 : index
    %c0_28 = arith.constant 0 : index
    %32 = vector.load %arg12[%c0_27, %c0_28] : memref<8x8xf32, #tpu.memory_space<vmem>>, vector<8x8xf32>
    tpu.vector_store %arg12[%c0_27, %c0_28], %31 {strides = array<i32>} : memref<8x8xf32, #tpu.memory_space<vmem>>, vector<8x8xf32>,
    return
  }
  func.func @transform_0(%arg0: i32) -> (i32, i32) {
    %c0_i32 = arith.constant 0 : i32
    %c0_i32_0 = arith.constant 0 : i32
    return %arg0, %c0_i32 : i32, i32
  }
  func.func @transform_1(%arg0: i32) -> (i32, i32) {
    %c0_i32 = arith.constant 0 : i32
    %c0_i32_0 = arith.constant 0 : i32
    %c0_i32_1 = arith.constant 0 : i32
    return %c0_i32, %c0_i32_0 : i32, i32
  }
  func.func @transform_2(%arg0: i32) -> (i32, i32) {
    %c0_i32 = arith.constant 0 : i32
    %c0_i32_0 = arith.constant 0 : i32
    %c0_i32_1 = arith.constant 0 : i32
    return %c0_i32, %c0_i32_0 : i32, i32
  }
  func.func @transform_3(%arg0: i32) -> (i32, i32) {
    %c0_i32 = arith.constant 0 : i32
    %c0_i32_0 = arith.constant 0 : i32
    %c0_i32_1 = arith.constant 0 : i32
    return %c0_i32, %c0_i32_0 : i32, i32
  }
  func.func @transform_4(%arg0: i32) -> (i32, i32) {
    %c0_i32 = arith.constant 0 : i32
    %c0_i32_0 = arith.constant 0 : i32
    %c0_i32_1 = arith.constant 0 : i32
    return %c0_i32, %c0_i32_0 : i32, i32
  }
  func.func @transform_5(%arg0: i32) -> (i32, i32) {
    %c0_i32 = arith.constant 0 : i32
    %c0_i32_0 = arith.constant 0 : i32
    %c0_i32_1 = arith.constant 0 : i32
    return %c0_i32, %c0_i32_0 : i32, i32
  }
  func.func @transform_6(%arg0: i32) -> (i32, i32) {
    %c0_i32 = arith.constant 0 : i32
    %c0_i32_0 = arith.constant 0 : i32
    %c0_i32_1 = arith.constant 0 : i32
    return %c0_i32, %c0_i32_0 : i32, i32
  }
  func.func @transform_7(%arg0: i32) -> (i32, i32) {
    %c0_i32 = arith.constant 0 : i32
    %c0_i32_0 = arith.constant 0 : i32
    %c0_i32_1 = arith.constant 0 : i32
    return %c0_i32, %c0_i32_0 : i32, i32
  }
  func.func @transform_8(%arg0: i32) -> (i32, i32) {
    %c0_i32 = arith.constant 0 : i32
    %c0_i32_0 = arith.constant 0 : i32
    %c0_i32_1 = arith.constant 0 : i32
    return %c0_i32, %c0_i32_0 : i32, i32
  }
  func.func @transform_9(%arg0: i32) -> (i32, i32) {
    %c0_i32 = arith.constant 0 : i32
    %c0_i32_0 = arith.constant 0 : i32
    %c0_i32_1 = arith.constant 0 : i32
    return %c0_i32, %c0_i32_0 : i32, i32
  }
  func.func @transform_10(%arg0: i32) -> (i32, i32) {
    %c0_i32 = arith.constant 0 : i32
    %c0_i32_0 = arith.constant 0 : i32
    %c0_i32_1 = arith.constant 0 : i32
    return %c0_i32, %c0_i32_0 : i32, i32
  }
  func.func @transform_11(%arg0: i32) -> (i32, i32) {
    %c0_i32 = arith.constant 0 : i32
    %c0_i32_0 = arith.constant 0 : i32
    return %arg0, %c0_i32 : i32, i32
  }
}

</mosaic_0001>

<bundles_post_ra>
// kernel: tpu_custom_call.1
= control target key start
LH: loop header
LB: loop body
LE: loop exit
PB: predicated region body
PF: predicated region fallthrough
CT: control target
= control target key end

     0   :  { %16 = vsyncpa [#allocation3], 0  ;;  %s913_s0 = inlined_call_operand.vmem [shape: f32[2,40], index: 0, kind: input, shape index: {}]   ;;  %s914_s1 = inlined_call_operand.hbm [shape: f32[40,64], index: 1, kind: input, shape index: {}]   ;;  %s915_s2 = inlined_call_operand.vmem [shape: f32[1,64], index: 2, kind: input, shape index: {}]   ;;  %s916_s3 = inlined_call_operand.vmem [shape: f32[64,64], index: 3, kind: input, shape index: {}]   ;;  %s917_s4 = inlined_call_operand.vmem [shape: f32[1,64], index: 4, kind: input, shape index: {}]   ;;  %s918_s5 = inlined_call_operand.vmem [shape: f32[64,64], index: 5, kind: input, shape index: {}]   ;;  %s919_s6 = inlined_call_operand.vmem [shape: f32[1,64], index: 6, kind: input, shape index: {}]   ;;  %s920_s7 = inlined_call_operand.vmem [shape: f32[64,32], index: 7, kind: input, shape index: {}]   ;;  %s921_s8 = inlined_call_operand.vmem [shape: f32[1,32], index: 8, kind: input, shape index: {}]   ;;  %s922_s9 = inlined_call_operand.vmem [shape: f32[32,8], index: 9, kind: input, shape index: {}]   ;;  %s923_s10 = inlined_call_operand.vmem [shape: f32[1,8], index: 10, kind: input, shape index: {}]   ;;  %s924_s11 = inlined_call_operand.hbm [shape: f32[2,8], index: 11, kind: output, shape index: {}]  }
   0x1   :  { %17 = vsyncpa [#allocation4], 0  ;;  %s691_s17 = smov [#allocation2]  }
   0x2   :  { %s25_s18 = sshll.u32 %s691_s17, 4  ;;  %s26_s18 = int_to_ptr.vmem [resolvable:$true] %s25_s18 }
   0x3   :  { %s655_s19 = scalar_lea.vmem %s26_s18, 640  ;;  %p660_p1 = scmp.lt.s32.totalorder %s26_s18, %s26_s18 }
   0x4   :  { %p656_p0 = scmp.ne.s32.totalorder %s26_s18, %s655_s19  ;;  %p661_p2 = scmp.lt.s32.totalorder %s655_s19, %s655_s19 }
   0x6   :  { %p662_p3 = por %p661_p2, %p660_p1 }
   0x8   :  { %p663_p4 = pnand %p662_p3, %p656_p0 }
   0xa   :  { %666 = shalt.err (!%p663_p4)
}
   0xb   :  { %s692_s20 = smov 128   ;;  %s693_s21 = smov 8  }
   0xc   :  { %31 = dma.hbm_to_vmem [thread:$0]  %s914_s1, 640, %s26_s18, [#allocation3], %s692_s20, %s692_s20, %s693_s21  }
   0xd   :  { %687 = dma.done.wait [#allocation3], 640  }
   0xe   :  { %688 = vsyncadd [#allocation3], 4294966656  ;;  %v694_v0 = vmov 0.0   ;;  %vm695_vm0 = vmmov 0   ;;  %v58_v1 = vld [vmem:[#allocation2 + $0x20] sm:$0xff]  ;;  %v57_v2 = vld [vmem:[#allocation2 + $0x18] sm:$0xff] }
   0xf   :  { %558 = vmatprep.subr.mxu0 %v694_v0  ;;  %568 = vmatprep.mubr.msk.f32.mxu0 %vm695_vm0, %v694_v0  ;;  %v56_v3 = vld [vmem:[#allocation2 + $0x10] sm:$0xff]  ;;  %v148_v4 = vld [vmem:[%s916_s3 + $0x38] sm:$0xff]  ;;  %v55_v6 = vld [vmem:[#allocation2 + $0x8] sm:$0xff]  ;;  %vm66_vm1 = vcmask 326656   ;;  %vm156_vm2 = vcmask 523264   ;;  %vm417_vm3 = vcmask 261120  }
  0x10   :  { %571 = vmatprep.subr.mxu1 %v694_v0  ;;  %587 = vmatprep.mubr.msk.f32.mxu1 %vm695_vm0, %v694_v0  ;;  %v147_v5 = vld [vmem:[%s916_s3 + $0x30] sm:$0xff]  ;;  %v146_v7 = vld [vmem:[%s916_s3 + $0x28] sm:$0xff]  ;;  %v54_v8 = vld [vmem:[#allocation2] sm:$0xff]  ;;  %vm491_vm4 = vcmask 64512  }
  0x11   :  { %559 = vmatpush3.msra.mxu0 %v58_v1  ;;  %572 = vmatpush3.msra.mxu1 %v148_v4  ;;  %v145_v9 = vld [vmem:[%s916_s3 + $0x20] sm:$0xff]  ;;  %v237_v11 = vld [vmem:[%s918_s5 + $0x38] sm:$0xff]  ;;  %v236_v13 = vld [vmem:[%s918_s5 + $0x30] sm:$0xff] }
  0x12   :  { %560 = vmatprep.subr.mxu0 %v694_v0  ;;  %573 = vmatprep.subr.mxu1 %v694_v0  ;;  %v53_v10 = vld [vmem:[%s913_s0] sm:$0xff]  ;;  %v144_v12 = vld [vmem:[%s916_s3 + $0x18] sm:$0xff]  ;;  %v235_v14 = vld [vmem:[%s918_s5 + $0x28] sm:$0xff] }
  0x13   :  { %561 = vmatpush3.msra.mxu0 %v57_v2  ;;  %574 = vmatpush3.msra.mxu1 %v147_v5  ;;  %v234_v15 = vld [vmem:[%s918_s5 + $0x20] sm:$0xff]  ;;  %v233_v16 = vld [vmem:[%s918_s5 + $0x18] sm:$0xff]  ;;  %v143_v17 = vld [vmem:[%s916_s3 + $0x10] sm:$0xff] }
  0x14   :  { %562 = vmatprep.subr.mxu0 %v694_v0  ;;  %575 = vmatprep.subr.mxu1 %v694_v0  ;;  %v232_v18 = vld [vmem:[%s918_s5 + $0x10] sm:$0xff]  ;;  %v142_v19 = vld [vmem:[%s916_s3 + $0x8] sm:$0xff]  ;;  %v141_v21 = vld [vmem:[%s916_s3] sm:$0xff] }
  0x15   :  { %563 = vmatpush3.msra.mxu0 %v56_v3  ;;  %576 = vmatpush3.msra.mxu1 %v146_v7  ;;  %v231_v20 = vld [vmem:[%s918_s5 + $0x8] sm:$0xff]  ;;  %v230_v22 = vld [vmem:[%s918_s5] sm:$0xff]  ;;  %v324_v28 = vld [vmem:[%s920_s7 + $0x38] sm:$0xff] }
  0x16   :  { %564 = vmatprep.subr.mxu0 %v694_v0  ;;  %577 = vmatprep.subr.mxu1 %v694_v0  ;;  %v510_v23 = vld [vmem:[%s915_s2] ss:$0 sm:$0xff]  ;;  %v323_v29 = vld [vmem:[%s920_s7 + $0x30] sm:$0xff]  ;;  %v322_v30 = vld [vmem:[%s920_s7 + $0x28] sm:$0xff] }
  0x17   :  { %565 = vmatpush3.msra.mxu0 %v55_v6  ;;  %578 = vmatpush3.msra.mxu1 %v145_v9  ;;  %v321_v31 = vld [vmem:[%s920_s7 + $0x20] sm:$0xff]  ;;  %v320_v32 = vld [vmem:[%s920_s7 + $0x18] sm:$0xff]  ;;  %v319_v33 = vld [vmem:[%s920_s7 + $0x10] sm:$0xff] }
  0x18   :  { %566 = vmatprep.subr.mxu0 %v694_v0  ;;  %579 = vmatprep.subr.mxu1 %v694_v0  ;;  %v318_v34 = vld [vmem:[%s920_s7 + $0x8] sm:$0xff]  ;;  %v317_v35 = vld [vmem:[%s920_s7] sm:$0xff]  ;;  %v409_v36 = vld [vmem:[%s922_s9 + $0x18] sm:$0xff] }
  0x19   :  { %567 = vmatpush3.msra.mxu0 %v54_v8  ;;  %580 = vmatpush3.msra.mxu1 %v144_v12  ;;  %v512_v37 = vld [vmem:[%s917_s4] ss:$0 sm:$0xff]  ;;  %v408_v47 = vld [vmem:[%s922_s9 + $0x10] sm:$0xff]  ;;  %v407_v48 = vld [vmem:[%s922_s9 + $0x8] sm:$0xff] }
  0x1a   :  { %569 = vmatmul.mubr.msk.f32.vlgmr.msra.gmra.mxu0 %vm66_vm1, %v53_v10  ;;  %590 = vmatprep.subr.mxu0 %v694_v0  ;;  %v514_v39 = vld [vmem:[%s919_s6] ss:$0 sm:$0xff] }
  0x1b   :  { %591 = vmatpush3.msra.mxu0 %v237_v11  ;;  %581 = vmatprep.subr.mxu1 %v694_v0  ;;  %v406_v49 = vld [vmem:[%s922_s9] sm:$0xff] }
  0x1c   :  { %592 = vmatprep.subr.mxu0 %v694_v0  ;;  %606 = vmatprep.mubr.msk.f32.mxu0 %vm695_vm0, %v694_v0  ;;  %v516_v50 = vld [vmem:[%s921_s8] ss:$0 sm:$0xff] }
  0x1d   :  { %593 = vmatpush3.msra.mxu0 %v236_v13  ;;  %582 = vmatpush3.msra.mxu1 %v143_v17  ;;  %v518_v55 = vld [vmem:[%s923_s10] ss:$0 sm:$0xff] }
  0x1e   :  { %594 = vmatprep.subr.mxu0 %v694_v0  ;;  %583 = vmatprep.subr.mxu1 %v694_v0 }
  0x1f   :  { %595 = vmatpush3.msra.mxu0 %v235_v14  ;;  %584 = vmatpush3.msra.mxu1 %v142_v19 }
  0x20   :  { %596 = vmatprep.subr.mxu0 %v694_v0  ;;  %585 = vmatprep.subr.mxu1 %v694_v0 }
  0x21   :  { %597 = vmatpush3.msra.mxu0 %v234_v15  ;;  %586 = vmatpush3.msra.mxu1 %v141_v21 }
  0x22   :  { %598 = vmatprep.subr.mxu0 %v694_v0  ;;  %609 = vmatprep.subr.mxu1 %v694_v0 }
  0x23   :  { %599 = vmatpush3.msra.mxu0 %v233_v16 }
  0x24   :  { %600 = vmatprep.subr.mxu0 %v694_v0 }
  0x25   :  { %601 = vmatpush3.msra.mxu0 %v232_v18 }
  0x26   :  { %602 = vmatprep.subr.mxu0 %v694_v0 }
  0x27   :  { %603 = vmatpush3.msra.mxu0 %v231_v20 }
  0x28   :  { %604 = vmatprep.subr.mxu0 %v694_v0 }
  0x29   :  { %605 = vmatpush3.msra.mxu0 %v230_v22 }
  0x2a   :  { %628 = vmatprep.subr.mxu0 %v694_v0 }
  0xda   :  { %v136_v24 = vpop.f32.mrf.mxu0 }
  0xdb   :  { %v137_v25 = vadd.f32 %v510_v23, %v136_v24 }
  0xdc   :  { %v570_v26 = vpop.f32.mrf.mxu0 }
  0xdd   :  { %v140_v27 = vmax.f32 %v137_v25, 0.0 }
  0xdf   :  { %588 = vmatmul.mubr.msk.f32.vlgmr.msra.gmra.mxu1 %vm156_vm2, %v140_v27  ;;  %607 = vmatmul.mubr.msk.f32.vlgmr.msra.gmra.mxu0 %vm156_vm2, %v140_v27 }
  0xe0   :  { %610 = vmatpush3.msra.mxu1 %v324_v28  ;;  %625 = vmatprep.mubr.msk.f32.mxu1 %vm695_vm0, %v694_v0 }
  0xe1   :  { %611 = vmatprep.subr.mxu1 %v694_v0  ;;  %636 = vmatprep.mubr.msk.f32.mxu0 %vm695_vm0, %v694_v0 }
  0xe2   :  { %612 = vmatpush3.msra.mxu1 %v323_v29  ;;  %629 = vmatpush3.msra.mxu0 %v409_v36 }
  0xe3   :  { %613 = vmatprep.subr.mxu1 %v694_v0  ;;  %630 = vmatprep.subr.mxu0 %v694_v0 }
  0xe4   :  { %614 = vmatpush3.msra.mxu1 %v322_v30  ;;  %631 = vmatpush3.msra.mxu0 %v408_v47 }
  0xe5   :  { %615 = vmatprep.subr.mxu1 %v694_v0  ;;  %632 = vmatprep.subr.mxu0 %v694_v0 }
  0xe6   :  { %616 = vmatpush3.msra.mxu1 %v321_v31  ;;  %633 = vmatpush3.msra.mxu0 %v407_v48 }
  0xe7   :  { %617 = vmatprep.subr.mxu1 %v694_v0  ;;  %634 = vmatprep.subr.mxu0 %v694_v0 }
  0xe8   :  { %618 = vmatpush3.msra.mxu1 %v320_v32  ;;  %635 = vmatpush3.msra.mxu0 %v406_v49 }
  0xe9   :  { %619 = vmatprep.subr.mxu1 %v694_v0 }
  0xea   :  { %620 = vmatpush3.msra.mxu1 %v319_v33 }
  0xeb   :  { %621 = vmatprep.subr.mxu1 %v694_v0 }
  0xec   :  { %622 = vmatpush3.msra.mxu1 %v318_v34 }
  0xed   :  { %623 = vmatprep.subr.mxu1 %v694_v0 }
  0xee   :  { %624 = vmatpush3.msra.mxu1 %v317_v35 }
 0x19f   :  { %v226_v38 = vpop.f32.mrf.mxu1  ;;  %v311_v40 = vpop.f32.mrf.mxu0 }
 0x1a0   :  { %v227_v41 = vadd.f32 %v512_v37, %v226_v38  ;;  %v312_v45 = vadd.f32 %v514_v39, %v311_v40 }
 0x1a1   :  { %v589_v42 = vpop.f32.mrf.mxu1  ;;  %v608_v43 = vpop.f32.mrf.mxu0 }
 0x1a2   :  { %v315_v44 = vmul.f32 %v227_v41, %v140_v27 }
 0x1a4   :  { %v316_v46 = vadd.f32 %v315_v44, %v312_v45 }
 0x1a6   :  { %626 = vmatmul.mubr.msk.f32.vlgmr.msra.gmra.mxu1 %vm156_vm2, %v316_v46 }
 0x266   :  { %v401_v51 = vpop.f32.mrf.mxu1 }
 0x267   :  { %v402_v52 = vadd.f32 %v516_v50, %v401_v51 }
 0x268   :  { %v627_v53 = vpop.f32.mrf.mxu1 }
 0x269   :  { %v405_v54 = vmax.f32 %v402_v52, 0.0 }
 0x26b   :  { %637 = vmatmul.mubr.msk.f32.vlgmr.msra.gmra.mxu0 %vm417_vm3, %v405_v54 }
 0x32b   :  { %v487_v56 = vpop.f32.mrf.mxu0 }
 0x32c   :  { %v488_v57 = vadd.f32 %v518_v55, %v487_v56 }
 0x32d   :  { %v638_v58 = vpop.f32.mrf.mxu0 }
 0x32e   :  { %492 = vst.msk [vmem:[#allocation5] sm:$0xff] %vm491_vm4, %v488_v57 }
 0x32f   :  { %497 = vsyncadd [#allocation4], 96  ;;  %s696_s9 = smov [#allocation5]  }
 0x330   :  { %s498_s20 = sshll.u32 %s696_s9, 4  ;;  %s499_s20 = int_to_ptr.vmem [resolvable:$true] %s498_s20 }
 0x331   :  { %s667_s8 = scalar_lea.vmem %s499_s20, 32  ;;  %s671_s21 = scalar_lea.vmem %s499_s20, 128 }
 0x332   :  { %p668_p5 = scmp.ne.s32.totalorder %s499_s20, %s667_s8  ;;  %p672_p6 = scmp.lt.s32.totalorder %s499_s20, %s499_s20 }
 0x333   :  { %p673_p7 = scmp.lt.s32.totalorder %s671_s21, %s667_s8 }
 0x335   :  { %p674_p8 = por %p673_p7, %p672_p6 }
 0x337   :  { %p675_p9 = pnand %p674_p8, %p668_p5 }
 0x339   :  { %678 = shalt.err (!%p675_p9)
}
 0x33a   :  { %s697_s22 = smov 32   ;;  %s698_s23 = smov 2  }
 0x33b   :  { %504 = dma.vmem_to_hbm [thread:$0]  %s499_s20, 32, %s924_s11, [#allocation4], %s697_s22, %s697_s22, %s698_s23  }
 0x33c   :  { %689 = dma.done.wait [#allocation4], 128  }
 0x33d   :  { %690 = vsyncadd [#allocation4], 4294967168 }
 0x33e   :  { %508 = vsyncpa [#allocation3], 1 }
 0x33f   :  { %509 = vsyncpa [#allocation4], 1 }

</bundles_post_ra>
